<compile_context>
chip_gen: v5e
topology: v5e:2x2
jax: 0.10.0
libtpu: 0.0.40
codegen_flags: <defaults>
</compile_context>

<pallas_src>
import functools

import jax
import jax.numpy as jnp
from jax.experimental import pallas as pl
from jax.experimental.pallas import tpu as pltpu

_LANE = 128


def _ceil_div(a, b):
    return -(-a // b)


def pd_down(x, f):
    """Pixel-unshuffle downsampling (reference only): (B,C,H,W)->(B,C*f*f,H//f,W//f)."""
    B, C, H, W = x.shape
    assert H % f == 0 and W % f == 0, "spatial dims must be divisible by pd_factor"
    x = x.reshape(B, C, H // f, f, W // f, f)
    x = jnp.transpose(x, (0, 1, 3, 5, 2, 4))
    return x.reshape(B, C * f * f, H // f, W // f)


# ---------------------------------------------------------------------------
# Kernel bodies
# ---------------------------------------------------------------------------

def _flat_sum_kernel(x_ref, y_ref, out_ref, *, loss_type, slab, total_groups, ragged):
    """(chunk_groups, sub, 128) tiles -> (sub, 128) f32 partial sum, strip-mined."""
    chunk = x_ref.shape[0]
    num_slabs = chunk // slab
    base = pl.program_id(0) * chunk

    def body(i, acc):
        start = pl.multiple_of(i * slab, slab)
        xs = x_ref[pl.ds(start, slab)].astype(jnp.float32)
        ys = y_ref[pl.ds(start, slab)].astype(jnp.float32)
        d = xs - ys
        v = jnp.abs(d) if loss_type == "l1" else d * d
        if ragged:
            # Boundary blocks contain undefined data: mask with select (NaN-safe).
            gidx = base + start + jax.lax.broadcasted_iota(jnp.int32, v.shape, 0)
            v = jnp.where(gidx < total_groups, v, 0.0)
        # Reduce over the leading (untiled) axis: pure VPU adds, no XLU tree.
        return acc + jnp.sum(v, axis=0)

    acc = jax.lax.fori_loop(0, num_slabs, body,
                            jnp.zeros(x_ref.shape[1:], jnp.float32))
    out_ref[0] = acc


def _rows_sum_kernel(x_ref, y_ref, out_ref, *, loss_type, total_rows, ragged):
    """(block_rows, W) tile -> (1, W) f32 partial sum (zero-copy fallback path)."""
    xs = x_ref[...].astype(jnp.float32)
    ys = y_ref[...].astype(jnp.float32)
    d = xs - ys
    v = jnp.abs(d) if loss_type == "l1" else d * d
    if ragged:
        ridx = (pl.program_id(0) * x_ref.shape[0]
                + jax.lax.broadcasted_iota(jnp.int32, v.shape, 0))
        v = jnp.where(ridx < total_rows, v, 0.0)
    out_ref[0] = jnp.sum(v, axis=0, keepdims=True)


# ---------------------------------------------------------------------------
# Wrapper
# ---------------------------------------------------------------------------

def subpatch_loss(x, y, loss_type: str = "l1", pd_factor: int = 5,
                  chunk_groups: int | None = None, block_rows: int | None = None):
    """Forward pass of SubPatchLoss (mean L1/L2 between pd_down(x) and pd_down(y))."""
    assert x.shape == y.shape and x.dtype == y.dtype, "x and y must match"
    assert x.ndim == 4, "expected (B, C, H, W)"
    assert loss_type in ("l1", "l2")
    B, C, H, W = x.shape
    # Mirror pd_down's requirement even though the permutation itself is elided.
    assert H % pd_factor == 0 and W % pd_factor == 0, (
        "spatial dims must be divisible by pd_factor")

    N = B * C * H * W
    itemsize = jnp.dtype(x.dtype).itemsize
    packing = max(1, 4 // itemsize)
    sub = 8 * packing            # dtype-aware sublane count (full vreg packing)
    tile = sub * _LANE           # elements per fully-packed vreg tile

    if N % tile == 0:
        # -------------------- dense flat path (no copies) --------------------
        groups = N // tile
        if chunk_groups is None:
            chunk_groups = max(1, (4 << 20) // (tile * itemsize))   # ~4 MiB / input
            # Keep >= ~4 chunks so the "parallel" grid axis can use both TCs (v7x).
            chunk_groups = min(chunk_groups, _ceil_div(groups, 4))
        chunk_groups = max(1, min(int(chunk_groups), groups))
        slab = min(32, chunk_groups)
        chunk_groups = (chunk_groups // slab) * slab
        num_chunks = _ceil_div(groups, chunk_groups)
        ragged = (groups % chunk_groups) != 0

        x2 = x.reshape(groups, sub, _LANE)   # contiguous reshape: free bitcast
        y2 = y.reshape(groups, sub, _LANE)

        block_bytes = chunk_groups * tile * itemsize
        vmem_limit = int(min(max(4 * block_bytes + 3 * slab * tile * 4 + (4 << 20),
                                 32 << 20), 48 << 20))
        cost = pl.CostEstimate(flops=3 * N, transcendentals=0,
                               bytes_accessed=2 * N * itemsize
                               + num_chunks * sub * _LANE * 4)

        kernel = functools.partial(_flat_sum_kernel, loss_type=loss_type,
                                   slab=slab, total_groups=groups, ragged=ragged)
        partials = pl.pallas_call(
            kernel,
            out_shape=jax.ShapeDtypeStruct((num_chunks, sub, _LANE), jnp.float32),
            grid_spec=pltpu.PrefetchScalarGridSpec(
                num_scalar_prefetch=0,
                grid=(num_chunks,),
                in_specs=[
                    pl.BlockSpec((chunk_groups, sub, _LANE), lambda c: (c, 0, 0)),
                    pl.BlockSpec((chunk_groups, sub, _LANE), lambda c: (c, 0, 0)),
                ],
                out_specs=pl.BlockSpec((1, sub, _LANE), lambda c: (c, 0, 0)),
            ),
            compiler_params=pltpu.CompilerParams(
                dimension_semantics=("parallel",),
                vmem_limit_bytes=vmem_limit,
            ),
            cost_estimate=cost,
        )(x2, y2)
    else:
        # -------------- general zero-copy path: (rows, W) blocks --------------
        R = N // W
        lanes = _ceil_div(W, _LANE) * _LANE   # VMEM lane padding of the last dim
        if block_rows is None:
            block_rows = max(sub, ((2 << 20) // (lanes * itemsize)) // sub * sub)
            block_rows = min(block_rows,
                             max(sub, _ceil_div(_ceil_div(R, 4), sub) * sub))
        block_rows = max(sub, (int(block_rows) // sub) * sub)
        block_rows = min(block_rows, _ceil_div(R, sub) * sub)
        num_chunks = _ceil_div(R, block_rows)
        ragged = (R % block_rows) != 0

        x2 = x.reshape(R, W)   # contiguous reshape: free
        y2 = y.reshape(R, W)

        block_vmem = block_rows * lanes * itemsize
        vmem_limit = int(min(max(4 * block_vmem + 3 * block_rows * lanes * 4 + (4 << 20),
                                 32 << 20), 48 << 20))
        cost = pl.CostEstimate(flops=3 * N, transcendentals=0,
                               bytes_accessed=2 * N * itemsize + num_chunks * W * 4)

        kernel = functools.partial(_rows_sum_kernel, loss_type=loss_type,
                                   total_rows=R, ragged=ragged)
        partials = pl.pallas_call(
            kernel,
            out_shape=jax.ShapeDtypeStruct((num_chunks, 1, W), jnp.float32),
            grid_spec=pltpu.PrefetchScalarGridSpec(
                num_scalar_prefetch=0,
                grid=(num_chunks,),
                in_specs=[
                    pl.BlockSpec((block_rows, W), lambda c: (c, 0)),
                    pl.BlockSpec((block_rows, W), lambda c: (c, 0)),
                ],
                out_specs=pl.BlockSpec((1, 1, W), lambda c: (c, 0, 0)),
            ),
            compiler_params=pltpu.CompilerParams(
                dimension_semantics=("parallel",),
                vmem_limit_bytes=vmem_limit,
            ),
            cost_estimate=cost,
        )(x2, y2)

    total = jnp.sum(partials, dtype=jnp.float32)
    # nn.L1Loss / nn.MSELoss default reduction='mean' over the TRUE element
    # count.  Loss scalar kept in float32 (do not downcast to bf16).
    return total / jnp.float32(N)


if __name__ == "__main__":
    key = jax.random.PRNGKey(0)
    k1, k2, k3, k4 = jax.random.split(key, 4)
    pd_factor = 5

    def ref_loss(a, b, loss_type):
        apd = pd_down(a.astype(jnp.float32), pd_factor)
        bpd = pd_down(b.astype(jnp.float32), pd_factor)
        d = apd - bpd
        return jnp.mean(jnp.abs(d)) if loss_type == "l1" else jnp.mean(d * d)

    # Case 1: f32, N % 1024 == 0 -> dense flat path; explicit small chunk to
    # exercise multi-chunk + ragged last chunk masking.
    xa = jax.random.normal(k1, (4, 4, 20, 80), dtype=jnp.float32)
    ya = jax.random.normal(k2, (4, 4, 20, 80), dtype=jnp.float32)
    o_a_l1 = subpatch_loss(xa, ya, "l1", pd_factor, chunk_groups=8)
    o_a_l2 = subpatch_loss(xa, ya, "l2", pd_factor)          # default chunking

    # Case 2: f32, N not a multiple of the tile -> zero-copy (rows, W) path;
    # explicit block_rows to exercise the ragged last block.
    xb = jax.random.normal(k3, (2, 4, 20, 20), dtype=jnp.float32)
    yb = jax.random.normal(k4, (2, 4, 20, 20), dtype=jnp.float32)
    o_b_l1 = subpatch_loss(xb, yb, "l1", pd_factor, block_rows=48)
    o_b_l2 = subpatch_loss(xb, yb, "l2", pd_factor)          # default chunking

    # Case 3: bf16 flat path (dtype-aware sublane packing, sub=16).
    xc = jax.random.normal(k1, (4, 4, 40, 80), dtype=jnp.float32).astype(jnp.bfloat16)
    yc = jax.random.normal(k2, (4, 4, 40, 80), dtype=jnp.float32).astype(jnp.bfloat16)
    o_c_l1 = subpatch_loss(xc, yc, "l1", pd_factor)

    results = jax.block_until_ready((o_a_l1, o_a_l2, o_b_l1, o_b_l2, o_c_l1))
    o_a_l1, o_a_l2, o_b_l1, o_b_l2, o_c_l1 = results

    assert jnp.allclose(o_a_l1, ref_loss(xa, ya, "l1"), atol=1e-5, rtol=1e-5)
    assert jnp.allclose(o_a_l2, ref_loss(xa, ya, "l2"), atol=1e-5, rtol=1e-5)
    assert jnp.allclose(o_b_l1, ref_loss(xb, yb, "l1"), atol=1e-5, rtol=1e-5)
    assert jnp.allclose(o_b_l2, ref_loss(xb, yb, "l2"), atol=1e-5, rtol=1e-5)
    assert jnp.allclose(o_c_l1, ref_loss(xc, yc, "l1"), atol=1e-5, rtol=1e-5)

    print("KERNEL_OK")
</pallas_src>

<mosaic_0001>
module attributes {stable_mosaic.version = 11 : i64} {
  func.func @_flat_sum_kernel(%arg0: i32, %arg1: memref<8x8x128xf32, #tpu.memory_space<vmem>>, %arg2: memref<8x8x128xf32, #tpu.memory_space<vmem>>, %arg3: memref<1x8x128xf32, #tpu.memory_space<vmem>>) attributes {dimension_semantics = [#tpu.dimension_semantics<parallel>], iteration_bounds = array<i64: 4>, scalar_prefetch = 0 : i64, scratch_operands = 0 : i64, tpu.core_type = #tpu.core_type<tc>, window_params = [{transform_indices = @transform_0, window_bounds = array<i64: 8, 8, 128>}, {transform_indices = @transform_1, window_bounds = array<i64: 8, 8, 128>}, {transform_indices = @transform_2, window_bounds = array<i64: 1, 8, 128>}]} {
    %c8_i32 = arith.constant 8 : i32
    %0 = arith.muli %arg0, %c8_i32 : i32
    %cst = arith.constant 0.000000e+00 : f32
    %1 = vector.broadcast %cst : f32 to vector<8x128xf32>
    %c0_i32 = arith.constant 0 : i32
    %c8_i32_0 = arith.constant 8 : i32
    %2 = arith.muli %c0_i32, %c8_i32_0 : i32
    %3 = tpu.assume_multiple %2, 8 : i32
    %4 = arith.index_cast %3 : i32 to index
    %c0 = arith.constant 0 : index
    %c0_1 = arith.constant 0 : index
    %5 = vector.load %arg1[%4, %c0, %c0_1] : memref<8x8x128xf32, #tpu.memory_space<vmem>>, vector<8x8x128xf32>
    %6 = arith.index_cast %3 : i32 to index
    %c0_2 = arith.constant 0 : index
    %c0_3 = arith.constant 0 : index
    %7 = vector.load %arg2[%6, %c0_2, %c0_3] : memref<8x8x128xf32, #tpu.memory_space<vmem>>, vector<8x8x128xf32>
    %8 = arith.subf %5, %7 : vector<8x8x128xf32>
    %9 = math.absf %8 : vector<8x8x128xf32>
    %10 = arith.addi %0, %3 : i32
    %11 = tpu.iota {dimensions = array<i32: 0>} : vector<8x8x128xi32>
    %12 = vector.broadcast %10 : i32 to vector<8x8x128xi32>
    %13 = arith.addi %12, %11 : vector<8x8x128xi32>
    %c25_i32 = arith.constant 25 : i32
    %14 = vector.broadcast %c25_i32 : i32 to vector<8x8x128xi32>
    %15 = arith.cmpi slt, %13, %14 : vector<8x8x128xi32>
    %cst_4 = arith.constant 0.000000e+00 : f32
    %16 = vector.broadcast %cst_4 : f32 to vector<8x8x128xf32>
    %17 = arith.select %15, %9, %16 : vector<8x8x128xi1>, vector<8x8x128xf32>
    %cst_5 = arith.constant dense<0.000000e+00> : vector<8x128xf32>
    %18 = vector.multi_reduction <add>, %17, %cst_5 [0] : vector<8x8x128xf32> to vector<8x128xf32>
    %19 = arith.addf %1, %18 : vector<8x128xf32>
    %c1_i32 = arith.constant 1 : i32
    %c0_6 = arith.constant 0 : index
    %c0_7 = arith.constant 0 : index
    %c0_8 = arith.constant 0 : index
    %20 = vector.load %arg3[%c0_6, %c0_7, %c0_8] : memref<1x8x128xf32, #tpu.memory_space<vmem>>, vector<1x8x128xf32>
    %21 = vector.shape_cast %20 : vector<1x8x128xf32> to vector<8x128xf32>
    %22 = vector.shape_cast %19 : vector<8x128xf32> to vector<1x8x128xf32>
    tpu.vector_store %arg3[%c0_6, %c0_7, %c0_8], %22 {strides = array<i32>} : memref<1x8x128xf32, #tpu.memory_space<vmem>>, vector<1x8x128xf32>,
    return
  }
  func.func @transform_0(%arg0: i32) -> (i32, i32, i32) {
    %c0_i32 = arith.constant 0 : i32
    %c0_i32_0 = arith.constant 0 : i32
    %c0_i32_1 = arith.constant 0 : i32
    return %arg0, %c0_i32, %c0_i32_0 : i32, i32, i32
  }
  func.func @transform_1(%arg0: i32) -> (i32, i32, i32) {
    %c0_i32 = arith.constant 0 : i32
    %c0_i32_0 = arith.constant 0 : i32
    %c0_i32_1 = arith.constant 0 : i32
    return %arg0, %c0_i32, %c0_i32_0 : i32, i32, i32
  }
  func.func @transform_2(%arg0: i32) -> (i32, i32, i32) {
    %c0_i32 = arith.constant 0 : i32
    %c0_i32_0 = arith.constant 0 : i32
    %c0_i32_1 = arith.constant 0 : i32
    return %arg0, %c0_i32, %c0_i32_0 : i32, i32, i32
  }
}

</mosaic_0001>

<bundles_post_ra>
// kernel: tpu_custom_call.1
= control target key start
LH: loop header
LB: loop body
LE: loop exit
PB: predicated region body
PF: predicated region fallthrough
CT: control target
= control target key end

     0   :  { %7 = vsyncpa [#allocation3], 0  ;;  %s877_s0 = inlined_call_operand.hbm [shape: f32[25,8,128], index: 0, kind: input, shape index: {}]   ;;  %s878_s1 = inlined_call_operand.hbm [shape: f32[25,8,128], index: 1, kind: input, shape index: {}]   ;;  %s879_s2 = inlined_call_operand.hbm [shape: f32[4,8,128], index: 2, kind: output, shape index: {}]  }
   0x1   :  { %9 = vsyncpa [#allocation3 + $0x1], 0 }
   0x2   :  { %10 = vsyncpa [#allocation6], 0 }
   0x3   :  { %12 = vsyncpa [#allocation6 + $0x1], 0 }
   0x4   :  { %13 = vsyncpa [#allocation4], 0 }
   0x5   :  { %15 = vsyncpa [#allocation4 + $0x1], 0  ;;  %s653_s9 = smov 0   ;;  %s655_s10 = smov 0  }
   0x6   :  { %s657_s11 = smov 0   ;;  %s659_s12 = smov 0  }
   0x7 LB: > { %s674_s13 = sadd.s32 4294967295, %s630_s12   ;;  %s409_s14 = sadd.s32 4294967294, %s630_s12   ;;  %s630_s12 = sphi %s659_s12, %s890_s12   ;;  %s626_s11 = sphi %s657_s11, %s889_s11   ;;  %s622_s10 = sphi %s655_s10, %s888_s10   ;;  %s618_s9 = sphi %s653_s9, %s887_s9  }
   0x8   : > { %s678_s15 = sadd.s32 1, %s630_s12   ;;  %s28_s16 = sadd.s32 1, %s626_s11 }
   0x9   : > { %s25_s17 = ssub.s32 %s630_s12, %s678_s15  ;;  %p35_p0 = scmp.ne.s32.totalorder %s626_s11, %s622_s10 }
   0xa   : > { %p26_p1 = scmp.eq.s32.totalorder %s25_s17, 0  ;;  %p36_p2 = scmp.eq.s32.totalorder %s630_s12, 0 }
   0xb   : > { %p41_p3 = scmp.ne.s32.totalorder %s622_s10, %s618_s9  ;;  %p42_p4 = scmp.eq.s32.totalorder %s674_s13, 0 }
   0xc   : > { %s690_s18 = scalar_select %p26_p1, %s626_s11, %s28_s16  }
   0xd   : > { %p692_p5 = por %p36_p2, %p35_p0  ;;  %p696_p6 = por %p42_p4, %p41_p3 }
   0xe   : > { %p91_p7 = scmp.eq.s32.totalorder %s674_s13, 3  ;;  %p97_p8 = scmp.eq.s32.totalorder %s409_s14, 3 }
   0xf   : > { %p411_p11 = scmp.ge.s32.totalorder %s630_s12, 4 }
  0x10   : > { %p701_p9 = por %p91_p7, %p35_p0  ;;  %p705_p10 = por %p97_p8, %p41_p3 }
  0x11   : > { %113 = sbr.rel (%p411_p11) target bundleno = 94 (0x5e), region = 16 }
  0x12   : > { %s883_s22 = scalar_select %p705_p10, 1, 0 }
  0x16   : > { %116 = sbr.rel (!%p692_p5) target bundleno = 58 (0x3a), region = 20  ;;  %s117_s23 = sand.u32 (%p692_p5), 1, %s626_s11  }
  0x17   : > { %s413_s24 = sshll.u32 (%p692_p5), %s630_s12, 3  ;;  %s412_s25 = sshll.u32 (%p692_p5), %s117_s23, 6 }
  0x18   : > { %s123_s26 = ssub.s32 (%p692_p5), 25, %s413_s24  ;;  %s717_s30 = scalar_lea.sflag (%p692_p5), [#allocation3], %s117_s23 }
  0x19   : > { %p124_p12 = scmp.lt.s32.totalorder (%p692_p5), %s123_s26, 8  ;;  %s121_s3 = scalar_lea.vmem (%p692_p5), [#allocation2], %s412_s25 }
  0x1b   : > { %s892_s26 = smov (!%p124_p12, %s123_s26), 8 }
  0x1c   : > { %s414_s27 = sshll.u32 %s892_s26, 3 }
  0x1d   : > { %s127_s28 = ssub.s32 64, %s414_s27 }
  0x1e   : > { %s128_s29 = sshll.u32 %s127_s28, 4 }
  0x1f   : > { %129 = vsyncadd %s717_s30, %s128_s29  ;;  %p720_p13 = scmp.ne.s32.totalorder %s414_s27, 0  ;;  %s435_s5 = sshll.u32 %s630_s12, 6 }
  0x20   : > { %s132_s8 = scalar_lea.hbm %s877_s0, %s435_s5  ;;  %s728_s14 = sshll.u32 %s121_s3, 4  ;;  %s137_s14 = int_to_ptr.vmem [resolvable:$true] %s728_s14 }
  0x21   : > { %s134_s16 = sshll.u32 %s132_s8, 4  ;;  %s418_s17 = sshll.u32 %s892_s26, 7  ;;  %s731_s16 = int_to_ptr.hbm [resolvable:$true] %s134_s16 }
  0x22   : > { %s482_s23 = sshra.s32 %s731_s16, 4  ;;  %s484_s24 = sshrl.u32 %s418_s17, 4  ;;  %s483_s23 = int_to_ptr.hbm [resolvable:$true] %s482_s23 }
  0x23   : > { %s489_s25 = scalar_lea.hbm %s483_s23, %s484_s24  ;;  %s493_s29 = scalar_lea.hbm %s877_s0, 200 }
  0x24   : > { %p490_p0 = scmp.ne.s32.totalorder %s483_s23, %s489_s25  ;;  %p494_p3 = scmp.lt.s32.totalorder %s483_s23, %s877_s0 }
  0x25   : > { %p495_p4 = scmp.lt.s32.totalorder %s493_s29, %s489_s25 }
  0x26   : > { %p491_p1 = pnand %p490_p0, %p720_p13 }
  0x27   : > { %p496_p7 = por %p495_p4, %p494_p3 }
  0x28   : > { %p492_p2 = pneg %p491_p1 }
  0x2a   : > { %p497_p8 = pnand %p496_p7, %p492_p2 }
  0x2c   : > { %500 = shalt.err (!%p497_p8)
}
  0x2d   : > { %s501_s6 = sshra.s32 %s137_s14, 4  ;;  %s632_s8 = smov [#allocation2]   ;;  %s502_s6 = int_to_ptr.vmem [resolvable:$true] %s501_s6 }
  0x2e   : > { %s508_s7 = scalar_lea.vmem %s502_s6, %s484_s24  ;;  %s512_s27 = scalar_lea.vmem %s632_s8, 128 }
  0x2f   : > { %p509_p11 = scmp.ne.s32.totalorder %s502_s6, %s508_s7  ;;  %p514_p1 = scmp.lt.s32.totalorder %s512_s27, %s508_s7 }
  0x31   : > { %p510_p12 = pnand %p509_p11, %p720_p13 }
  0x33   : > { %p511_p0 = pneg %p510_p12 }
  0x35   : > { %p516_p10 = pnand %p514_p1, %p511_p0 }
  0x37   : > { %519 = shalt.err (!%p516_p10)
}
  0x38   : > { %s633_s23 = smov 128   ;;  %s634_s25 = smov 8  }
  0x39   : > { %142 = dma.hbm_to_vmem [thread:$0]  (%p720_p13), %s731_s16, %s418_s17, %s137_s14, %s717_s30, %s633_s23, %s633_s23, %s634_s25  }
  0x3a PF: > { %145 = sbr.rel (!%p692_p5) target bundleno = 94 (0x5e), region = 24  ;;  %s146_s24 = sand.u32 (%p692_p5), 1, %s626_s11  }
  0x3b   : > { %s420_s28 = sshll.u32 (%p692_p5), %s630_s12, 3  ;;  %s419_s29 = sshll.u32 (%p692_p5), %s146_s24, 6 }
  0x3c   : > { %s152_s3 = ssub.s32 (%p692_p5), 25, %s420_s28  ;;  %s764_s7 = scalar_lea.sflag (%p692_p5), [#allocation6], %s146_s24 }
  0x3d   : > { %p153_p10 = scmp.lt.s32.totalorder (%p692_p5), %s152_s3, 8  ;;  %s150_s26 = scalar_lea.vmem (%p692_p5), [#allocation5], %s419_s29 }
  0x3f   : > { %s894_s3 = smov (!%p153_p10, %s152_s3), 8 }
  0x40   : > { %s421_s5 = sshll.u32 %s894_s3, 3 }
  0x41   : > { %s156_s6 = ssub.s32 64, %s421_s5 }
  0x42   : > { %s157_s4 = sshll.u32 %s156_s6, 4 }
  0x43   : > { %158 = vsyncadd %s764_s7, %s157_s4  ;;  %p767_p5 = scmp.ne.s32.totalorder %s421_s5, 0  ;;  %s436_s30 = sshll.u32 %s630_s12, 6 }
  0x44   : > { %s161_s17 = scalar_lea.hbm %s878_s1, %s436_s30  ;;  %s775_s8 = sshll.u32 %s150_s26, 4  ;;  %s166_s8 = int_to_ptr.vmem [resolvable:$true] %s775_s8 }
  0x45   : > { %s163_s27 = sshll.u32 %s161_s17, 4  ;;  %s425_s23 = sshll.u32 %s894_s3, 7  ;;  %s778_s27 = int_to_ptr.hbm [resolvable:$true] %s163_s27 }
  0x46   : > { %s521_s25 = sshra.s32 %s778_s27, 4  ;;  %s523_s24 = sshrl.u32 %s425_s23, 4  ;;  %s522_s25 = int_to_ptr.hbm [resolvable:$true] %s521_s25 }
  0x47   : > { %s528_s28 = scalar_lea.hbm %s522_s25, %s523_s24  ;;  %s532_s6 = scalar_lea.hbm %s878_s1, 200 }
  0x48   : > { %p529_p13 = scmp.ne.s32.totalorder %s522_s25, %s528_s28  ;;  %p533_p4 = scmp.lt.s32.totalorder %s522_s25, %s878_s1 }
  0x49   : > { %p534_p7 = scmp.lt.s32.totalorder %s532_s6, %s528_s28 }
  0x4a   : > { %p530_p2 = pnand %p529_p13, %p767_p5 }
  0x4b   : > { %p535_p8 = por %p534_p7, %p533_p4 }
  0x4c   : > { %p531_p3 = pneg %p530_p2 }
  0x4e   : > { %p536_p11 = pnand %p535_p8, %p531_p3 }
  0x50   : > { %539 = shalt.err (!%p536_p11)
}
  0x51   : > { %s540_s30 = sshra.s32 %s166_s8, 4  ;;  %s635_s16 = smov [#allocation5]   ;;  %s541_s30 = int_to_ptr.vmem [resolvable:$true] %s540_s30 }
  0x52   : > { %s547_s14 = scalar_lea.vmem %s541_s30, %s523_s24  ;;  %s551_s17 = scalar_lea.vmem %s635_s16, 128 }
  0x53   : > { %p548_p12 = scmp.ne.s32.totalorder %s541_s30, %s547_s14  ;;  %p553_p10 = scmp.lt.s32.totalorder %s551_s17, %s547_s14 }
  0x55   : > { %p549_p0 = pnand %p548_p12, %p767_p5 }
  0x57   : > { %p550_p1 = pneg %p549_p0 }
  0x59   : > { %p555_p13 = pnand %p553_p10, %p550_p1 }
  0x5b   : > { %558 = shalt.err (!%p555_p13)
}
  0x5c   : > { %s636_s25 = smov 128   ;;  %s637_s28 = smov 8  }
  0x5d   : > { %171 = dma.hbm_to_vmem [thread:$0]  (%p767_p5), %s778_s27, %s425_s23, %s166_s8, %s764_s7, %s636_s25, %s636_s25, %s637_s28  }
  0x5e PF: > { %p426_p2 = scmp.ge.s32.totalorder %s630_s12, 1  ;;  %p173_p3 = scmp.lt.s32.totalorder %s630_s12, 5 }
  0x60   : > { %p174_p4 = pnand %p426_p2, %p173_p3 }
  0x61   : > { %s807_s24 = sand.u32 (!%p174_p4), 1, %s622_s10  }
  0x62   : > { %177 = sbr.rel (%p174_p4) target bundleno = 131 (0x83), region = 28  ;;  %s427_s29 = sshll.u32 (!%p174_p4), %s807_s24, 6 }
  0x63   : > { %s180_s5 = scalar_lea.sflag (!%p174_p4), [#allocation3], %s807_s24  ;;  %s811_s19 = scalar_lea.vmem (!%p174_p4), [#allocation2], %s427_s29 }
  0x67   : > { %605 = dma.done.wait (%p696_p6), %s180_s5, 1024  }
  0x68   : > { %607 = vsyncadd (%p696_p6), %s180_s5, 4294966272  ;;  %s190_s3 = scalar_lea.sflag [#allocation6], %s807_s24  ;;  %s818_s7 = scalar_lea.vmem [#allocation5], %s427_s29 }
  0x69   : > { %609 = dma.done.wait (%p696_p6), %s190_s3, 1024  }
  0x6a   : > { %611 = vsyncadd (%p696_p6), %s190_s3, 4294966272  ;;  %s430_s8 = sshll.u32 %s674_s13, 3  ;;  %v233_v1 = vld [vmem:[%s811_s19] sm:$0xff]  ;;  %v234_v2 = vld [vmem:[%s811_s19 + $0x8] sm:$0xff]  ;;  %s429_s20 = sshll.u32 %s807_s24, 3 }
  0x6b   : > { %v267_v0 = vstv %s430_s8  ;;  %v235_v3 = vld [vmem:[%s811_s19 + $0x10] sm:$0xff]  ;;  %v236_v4 = vld [vmem:[%s811_s19 + $0x18] sm:$0xff]  ;;  %v237_v7 = vld [vmem:[%s811_s19 + $0x20] sm:$0xff]  ;;  %s311_s6 = scalar_lea.hbm %s879_s2, %s430_s8  ;;  %s219_s4 = scalar_lea.vmem [#allocation7], %s429_s20 }
  0x6c   : > { %v268_v5 = vadd.s32 1, %v267_v0  ;;  %v269_v6 = vadd.s32 2, %v267_v0  ;;  %v242_v8 = vld [vmem:[%s818_s7] sm:$0xff]  ;;  %v243_v9 = vld [vmem:[%s818_s7 + $0x8] sm:$0xff]  ;;  %v244_v10 = vld [vmem:[%s818_s7 + $0x10] sm:$0xff]  ;;  %v270_v13 = vadd.s32 3, %v267_v0 }
  0x6d   : > { %v245_v11 = vld [vmem:[%s818_s7 + $0x18] sm:$0xff]  ;;  %v250_v12 = vsub.f32 %v233_v1, %v242_v8  ;;  %v271_v14 = vadd.s32 4, %v267_v0  ;;  %v238_v15 = vld [vmem:[%s811_s19 + $0x28] sm:$0xff]  ;;  %v246_v16 = vld [vmem:[%s818_s7 + $0x20] sm:$0xff]  ;;  %v251_v18 = vsub.f32 %v234_v2, %v243_v9  ;;  %v252_v19 = vsub.f32 %v235_v3, %v244_v10  ;;  %s313_s26 = sshll.u32 %s219_s4, 4  ;;  %s315_s30 = sshll.u32 %s311_s6, 4  ;;  %s314_s26 = int_to_ptr.vmem [resolvable:$true] %s313_s26  ;;  %s316_s30 = int_to_ptr.hbm [resolvable:$true] %s315_s30 }
  0x6e   : > { %v247_v17 = vld [vmem:[%s818_s7 + $0x28] sm:$0xff]  ;;  %v253_v20 = vsub.f32 %v236_v4, %v245_v11  ;;  %vm275_vm0 = vcmp.lt.s32.totalorder %v267_v0, 25  ;;  %v254_v21 = vsub.f32 %v237_v7, %v246_v16  ;;  %vm276_vm1 = vcmp.lt.s32.totalorder %v268_v5, 25  ;;  %v239_v23 = vld [vmem:[%s811_s19 + $0x30] sm:$0xff]  ;;  %v240_v29 = vld [vmem:[%s811_s19 + $0x38] sm:$0xff]  ;;  %s301_s14 = scalar_lea.sflag [#allocation4], %s807_s24 }
  0x6f   : > { %v258_v22 = vand.u32 2147483647, %v250_v12  ;;  %vm277_vm2 = vcmp.lt.s32.totalorder %v269_v6, 25  ;;  %v248_v24 = vld [vmem:[%s818_s7 + $0x30] sm:$0xff]  ;;  %v259_v25 = vand.u32 2147483647, %v251_v18  ;;  %v255_v27 = vsub.f32 %v238_v15, %v247_v17 }
  0x70   : > { %v260_v26 = vand.u32 2147483647, %v252_v19  ;;  %v261_v28 = vand.u32 2147483647, %v253_v20  ;;  %v249_v30 = vld [vmem:[%s818_s7 + $0x38] sm:$0xff]  ;;  %v272_v31 = vadd.s32 5, %v267_v0  ;;  %v256_v34 = vsub.f32 %v239_v23, %v248_v24 }
  0x71   : > { %vm278_vm3 = vcmp.lt.s32.totalorder %v270_v13, 25  ;;  %v283_v32 = vsel %vm275_vm0, %v258_v22, 0.0  ;;  %v284_v33 = vsel %vm276_vm1, %v259_v25, 0.0  ;;  %v262_v35 = vand.u32 2147483647, %v254_v21  ;;  %s574_s16 = sshra.s32 %s316_s30, 4  ;;  %s575_s16 = int_to_ptr.hbm [resolvable:$true] %s574_s16 }
  0x72   : > { %v285_v36 = vsel %vm277_vm2, %v260_v26, 0.0  ;;  %v273_v37 = vadd.s32 6, %v267_v0  ;;  %vm279_vm4 = vcmp.lt.s32.totalorder %v271_v14, 25  ;;  %v291_v38 = vadd.f32 %v284_v33, %v283_v32  ;;  %s576_s13 = scalar_lea.hbm %s575_s16, 8  ;;  %s580_s28 = scalar_lea.hbm %s879_s2, 32 }
  0x73   : > { %v257_v39 = vsub.f32 %v240_v29, %v249_v30  ;;  %v263_v40 = vand.u32 2147483647, %v255_v27  ;;  %v286_v41 = vsel %vm278_vm3, %v261_v28, 0.0  ;;  %v274_v42 = vadd.s32 7, %v267_v0  ;;  %p577_p6 = scmp.ne.s32.totalorder %s575_s16, %s576_s13  ;;  %p581_p8 = scmp.lt.s32.totalorder %s575_s16, %s879_s2 }
  0x74   : > { %vm280_vm5 = vcmp.lt.s32.totalorder %v272_v31, 25  ;;  %v292_v43 = vadd.f32 %v291_v38, %v285_v36  ;;  %v264_v44 = vand.u32 2147483647, %v256_v34  ;;  %v287_v45 = vsel %vm279_vm4, %v262_v35, 0.0  ;;  %p582_p11 = scmp.lt.s32.totalorder %s580_s28, %s576_s13 }
  0x75   : > { %vm281_vm6 = vcmp.lt.s32.totalorder %v273_v37, 25  ;;  %v265_v47 = vand.u32 2147483647, %v257_v39  ;;  %v288_v48 = vsel %vm280_vm5, %v263_v40, 0.0  ;;  %vm282_vm7 = vcmp.lt.s32.totalorder %v274_v42, 25  ;;  %p578_p5 = pnand %p577_p6, %p701_p9 }
  0x76   : > { %v293_v46 = vadd.f32 %v292_v43, %v286_v41  ;;  %v289_v50 = vsel %vm281_vm6, %v264_v44, 0.0  ;;  %p583_p12 = por %p582_p11, %p581_p8 }
  0x77   : > { %v290_v52 = vsel %vm282_vm7, %v265_v47, 0.0  ;;  %p579_p7 = pneg %p578_p5 }
  0x78   : > { %v294_v49 = vadd.f32 %v293_v46, %v287_v45 }
  0x79   : > { %p584_p0 = pnand %p583_p12, %p579_p7 }
  0x7a   : > { %v295_v51 = vadd.f32 %v294_v49, %v288_v48 }
  0x7c   : > { %v296_v53 = vadd.f32 %v295_v51, %v289_v50 }
  0x7e   : > { %v297_v54 = vadd.f32 %v296_v53, %v290_v52 }
  0x80   : > { %299 = vst [vmem:[%s219_s4] sm:$0xff] %v297_v54 }
  0x81   : > { %587 = shalt.err (!%p584_p0)
}
  0x82   : > { %439 = dma.vmem_to_hbm [thread:$0]  (%p701_p9), %s314_s26, 128, %s316_s30, %s301_s14  }
  0x83 PF: > { %p445_p1 = scmp.ge.s32.totalorder %s630_s12, 2  ;;  %s327_s24 = sand.u32 1, %s618_s9  }
  0x84   : > { %p886_p10 = scmp.ne.s32.totalorder %s883_s22, 0  ;;  %s328_s19 = scalar_lea.sflag [#allocation4], %s327_s24 }
  0x86   : > { %p442_p13 = pnand %p445_p1, %p886_p10 }
  0x88   : > { %p443_p2 = pneg %p442_p13 }
  0x8a   : > { %613 = dma.done.wait (%p443_p2), %s328_s19, 128  }
  0x8b   : > { %615 = vsyncadd (%p443_p2), %s328_s19, 4294967168  ;;  %p18_p3 = scmp.ge.s32.totalorder %s678_s15, 6   ;;  %s887_s9 = smov %s622_s10 }
  0x8c   : > { %s888_s10 = smov %s626_s11  ;;  %s889_s11 = smov %s690_s18 }
  0x8d   : > { %s890_s12 = smov %s678_s15  ;;  %20 = sbr.rel (!%p18_p3) target bundleno = 7 (0x7), region = 88 }
  0x92   :  { %334 = vsyncpa [#allocation3], 1 }
  0x93   :  { %336 = vsyncpa [#allocation3 + $0x1], 1 }
  0x94   :  { %337 = vsyncpa [#allocation6], 1 }
  0x95   :  { %339 = vsyncpa [#allocation6 + $0x1], 1 }
  0x96   :  { %340 = vsyncpa [#allocation4], 1 }
  0x97   :  { %342 = vsyncpa [#allocation4 + $0x1], 1 }

</bundles_post_ra>
